<compile_context>
chip_gen: v7x
topology: tpu7x:2x2x1
jax: 0.10.0
libtpu: 0.0.40
codegen_flags: <defaults>
</compile_context>

<pallas_src>
import jax
import jax.numpy as jnp
from jax.experimental import pallas as pl
from jax.experimental.pallas import tpu as pltpu


# ---------------------------------------------------------------------------
# Probe: does this jax build accept single-buffered (pl.Buffered(1)) inputs in
# pallas_call BlockSpecs?  Constant-index weight blocks never need a second
# buffer, so this halves their VMEM footprint; fall back cleanly if absent.
# ---------------------------------------------------------------------------
def _probe_kernel(x_ref, o_ref):
    o_ref[...] = x_ref[...] + 1.0


def _probe_single_buffer_support():
    try:
        x = jnp.arange(8 * 128, dtype=jnp.float32).reshape(8, 128)
        fn = pl.pallas_call(
            _probe_kernel,
            out_shape=jax.ShapeDtypeStruct((16, 128), jnp.float32),
            grid=(2,),
            in_specs=[pl.BlockSpec((8, 128), lambda i: (0, 0),
                                   pipeline_mode=pl.Buffered(1))],
            out_specs=pl.BlockSpec((8, 128), lambda i: (i, 0)),
        )
        out = jax.block_until_ready(fn(x))
        return bool(jnp.allclose(out[:8], x + 1.0)
                    and jnp.allclose(out[8:], x + 1.0))
    except Exception:
        return False


_WEIGHT_PIPELINE_MODE = pl.Buffered(1) if _probe_single_buffer_support() else None


def _const_block_spec(shape):
    """BlockSpec for a grid-invariant (VMEM-resident) operand."""
    index_map = lambda i: (0,) * len(shape)
    if _WEIGHT_PIPELINE_MODE is not None:
        return pl.BlockSpec(shape, index_map, pipeline_mode=_WEIGHT_PIPELINE_MODE)
    return pl.BlockSpec(shape, index_map)


def _round_up(v, m):
    return ((v + m - 1) // m) * m


def _vmem_cap_bytes():
    try:
        kind = jax.devices()[0].device_kind.lower()
    except Exception:
        kind = ""
    if "v5" in kind or "v6" in kind:
        return 100 * 1024 * 1024      # 128 MiB physical on v5e/v6e
    return 48 * 1024 * 1024           # v7x: 64 MiB/TC physical; leave headroom


# ---------------------------------------------------------------------------
# Pallas kernel: fused classifier head on the CLS token
#   x_cls = x[:, 0, :] * mask[:, 0:1]                      (stand-in encoder gate)
#   h     = relu(x_cls @ W1 + b1)       (tm, D) @ (D, 512)   -> (tm, 512)
#   out   = h @ W2 + b2                 (tm, 512) @ (512, Op) -> (tm, Op)
# ---------------------------------------------------------------------------
def _head_kernel(x_ref, m_ref, w1_ref, b1_ref, w2_ref, b2_ref, o_ref):
    # Stand-in encoder gate on the CLS token; bf16 cast is done in-kernel (free
    # VPU work here) so the wrapper never materializes a bf16 copy in HBM.
    x = (x_ref[...] * m_ref[...]).astype(w1_ref.dtype)                 # (tm, D) bf16
    # Linear(encoder_dim, 512) + ReLU -- bf16 MXU operands, f32 accumulation.
    h = jnp.dot(x, w1_ref[...], preferred_element_type=jnp.float32)
    h = jnp.maximum(h + b1_ref[...], 0.0)                              # f32 VPU math
    # Final Linear(512, out_dim) -- cast activations back to bf16 for the MXU.
    out = jnp.dot(h.astype(w2_ref.dtype), w2_ref[...],
                  preferred_element_type=jnp.float32)
    o_ref[...] = (out + b2_ref[...]).astype(o_ref.dtype)               # bf16 writeback


def classifier_head(x, mask, w1, b1, w2, b2):
    """x: (B, S, D) f32, mask: (B, S) f32 -> logits (B, out_dim) f32."""
    B, S, D = x.shape
    H = w1.shape[1]
    O = w2.shape[1]

    # --- lane-dense output: pad the final layer to a multiple of 128 lanes ---
    O_pad = _round_up(O, 128)
    w2p = jnp.pad(w2, ((0, 0), (0, O_pad - O))) if O_pad != O else w2
    b2p = jnp.pad(b2, ((0, 0), (0, O_pad - O))) if O_pad != O else b2

    # --- batch tiling -------------------------------------------------------
    ALIGN = 16    # bf16 output sublane packing (also covers the f32 input's 8)
    TM_CAP = 512  # fat tiles: ~85% HBM roofline vs ~60% at 256 (v6e tile sweep)
    if B <= ALIGN:
        tm = ALIGN
    elif B <= 2 * TM_CAP:
        # >= 2 grid programs so both v7x TensorCores get work; on 1-TC v5e/v6e
        # the tiles stay as fat as possible to amortize per-step overhead.
        tm = min(TM_CAP, _round_up(pl.cdiv(B, 2), ALIGN))
    else:
        tm = TM_CAP
    grid_m = pl.cdiv(B, tm)
    B_pad = grid_m * tm

    # --- CLS-token gather -----------------------------------------------------
    # Preferred path: free view of x as (B, S*D); block index 0 along the
    # flattened axis fetches columns [0, D) == x[:, 0, :], so only B*D f32 are
    # read from HBM and no copy of the encoder output is materialized.
    if D % 128 == 0 and B_pad == B:
        x_in = x.reshape(B, S * D)
        m_in = mask[:, :1]
    else:
        # Batch padding (or D not a lane multiple): slice the CLS rows first so
        # padding only touches the small (B, D) array, never the full x.
        x_in = x[:, 0, :]
        m_in = mask[:, :1]
        if B_pad != B:
            x_in = jnp.pad(x_in, ((0, B_pad - B), (0, 0)))
            m_in = jnp.pad(m_in, ((0, B_pad - B), (0, 0)))

    w1b = w1.astype(jnp.bfloat16)
    w2b = w2p.astype(jnp.bfloat16)

    # --- VMEM budget ------------------------------------------------------------
    wbuf = 1 if _WEIGHT_PIPELINE_MODE is not None else 2
    vmem_est = (2 * tm * D * 4 + 2 * tm * 4            # x / mask tiles (f32, 2x buf)
                + wbuf * (D * H * 2 + H * 4)           # W1 bf16 + b1 f32
                + wbuf * (H * O_pad * 2 + O_pad * 4)   # W2 bf16 + b2 f32
                + 2 * tm * O_pad * 2                   # bf16 out tiles (2x buf)
                + tm * (H * 6 + D * 2))                # h (f32 + bf16), x bf16 temp
    vmem_limit = int(min(_vmem_cap_bytes(), max(32 * 1024 * 1024, 2 * vmem_est)))

    cost = pl.CostEstimate(
        flops=2 * B_pad * (D * H + H * O_pad),
        transcendentals=0,
        bytes_accessed=(B_pad * D * 4 + B_pad * 4
                        + D * H * 2 + H * 4
                        + H * O_pad * 2 + O_pad * 4
                        + B_pad * O_pad * 2),
    )

    out = pl.pallas_call(
        _head_kernel,
        out_shape=jax.ShapeDtypeStruct((B_pad, O_pad), jnp.bfloat16),
        grid_spec=pltpu.PrefetchScalarGridSpec(
            num_scalar_prefetch=0,
            grid=(grid_m,),
            in_specs=[
                pl.BlockSpec((tm, D), lambda i: (i, 0)),   # CLS rows only (f32)
                pl.BlockSpec((tm, 1), lambda i: (i, 0)),   # mask[:, 0]
                _const_block_spec((D, H)),                 # W1 (VMEM-resident)
                _const_block_spec((1, H)),                 # b1
                _const_block_spec((H, O_pad)),             # W2 (VMEM-resident)
                _const_block_spec((1, O_pad)),             # b2
            ],
            out_specs=pl.BlockSpec((tm, O_pad), lambda i: (i, 0)),
        ),
        compiler_params=pltpu.CompilerParams(
            dimension_semantics=("parallel",),             # megacore split on v7x
            vmem_limit_bytes=vmem_limit,
        ),
        cost_estimate=cost,
    )(x_in, m_in, w1b, b1, w2b, b2p)

    # Slice off batch/lane padding; upcast the tiny (B, O) result to f32.
    return out[:B, :O].astype(jnp.float32)


# ---------------------------------------------------------------------------
# SimpleClassifier forward (glue in plain JAX, hot path fused in Pallas)
# ---------------------------------------------------------------------------
def simple_classifier_forward(x, mask, params):
    # TODO(synk): `encoder` is an injected nn.Module in the PyTorch code (arch
    # unknown); stand-in encoder = mask-gated identity, applied only to the CLS
    # token inside the kernel (== (x * mask[..., None])[:, 0, :]).
    return classifier_head(x, mask, params["w1"], params["b1"],
                           params["w2"], params["b2"])


def init_params(key, encoder_dim, out_dim, hidden=512):
    # Deterministic init mimicking torch.nn.Linear (uniform +/- 1/sqrt(fan_in)).
    k1, k2, k3, k4 = jax.random.split(key, 4)
    lim1 = 1.0 / jnp.sqrt(encoder_dim)
    lim2 = 1.0 / jnp.sqrt(hidden)
    return {
        "w1": jax.random.uniform(k1, (encoder_dim, hidden), jnp.float32, -lim1, lim1),
        "b1": jax.random.uniform(k2, (1, hidden), jnp.float32, -lim1, lim1),
        "w2": jax.random.uniform(k3, (hidden, out_dim), jnp.float32, -lim2, lim2),
        "b2": jax.random.uniform(k4, (1, out_dim), jnp.float32, -lim2, lim2),
    }


if __name__ == "__main__":
    B, S, D, OUT = 2, 8, 128, 10
    key = jax.random.PRNGKey(0)
    kx, km, kp = jax.random.split(key, 3)

    x = jax.random.normal(kx, (B, S, D), dtype=jnp.float32)
    mask = (jax.random.uniform(km, (B, S)) > 0.2).astype(jnp.float32)
    mask = mask.at[:, 0].set(1.0)  # CLS position always valid

    params = init_params(kp, D, OUT)

    fwd = jax.jit(simple_classifier_forward)
    out = jax.block_until_ready(fwd(x, mask, params))

    # Reference check against plain JAX (f32); bf16 matmul/store => loose tol.
    x_cls = x[:, 0, :] * mask[:, :1]
    ref = jnp.maximum(x_cls @ params["w1"] + params["b1"], 0.0) @ params["w2"] + params["b2"]
    assert out.shape == (B, OUT)
    assert jnp.allclose(out, ref, atol=2e-2, rtol=2e-2), \
        f"max abs err {jnp.max(jnp.abs(out - ref))}"

    print("KERNEL_OK")
</pallas_src>

<mosaic_0001>
module attributes {stable_mosaic.version = 11 : i64} {
  func.func @_probe_kernel(%arg0: i32, %arg1: memref<8x128xf32, #tpu.memory_space<vmem>>, %arg2: memref<8x128xf32, #tpu.memory_space<vmem>>) attributes {dimension_semantics = [#tpu.dimension_semantics<arbitrary>], iteration_bounds = array<i64: 2>, scalar_prefetch = 0 : i64, scratch_operands = 0 : i64, tpu.core_type = #tpu.core_type<tc>, window_params = [{pipeline_mode = #tpu.pipeline_mode<synchronous>, transform_indices = @transform_0, window_bounds = array<i64: 8, 128>}, {transform_indices = @transform_1, window_bounds = array<i64: 8, 128>}]} {
    %c0 = arith.constant 0 : index
    %c0_0 = arith.constant 0 : index
    %0 = vector.load %arg1[%c0, %c0_0] : memref<8x128xf32, #tpu.memory_space<vmem>>, vector<8x128xf32>
    %cst = arith.constant 1.000000e+00 : f32
    %1 = vector.broadcast %cst : f32 to vector<8x128xf32>
    %2 = arith.addf %0, %1 : vector<8x128xf32>
    %c0_1 = arith.constant 0 : index
    %c0_2 = arith.constant 0 : index
    %3 = vector.load %arg2[%c0_1, %c0_2] : memref<8x128xf32, #tpu.memory_space<vmem>>, vector<8x128xf32>
    tpu.vector_store %arg2[%c0_1, %c0_2], %2 {strides = array<i32>} : memref<8x128xf32, #tpu.memory_space<vmem>>, vector<8x128xf32>,
    return
  }
  func.func @transform_0(%arg0: i32) -> (i32, i32) {
    %c0_i32 = arith.constant 0 : i32
    %c0_i32_0 = arith.constant 0 : i32
    %c0_i32_1 = arith.constant 0 : i32
    return %c0_i32, %c0_i32_0 : i32, i32
  }
  func.func @transform_1(%arg0: i32) -> (i32, i32) {
    %c0_i32 = arith.constant 0 : i32
    %c0_i32_0 = arith.constant 0 : i32
    return %arg0, %c0_i32 : i32, i32
  }
}

module attributes {stable_mosaic.version = 11 : i64} {
  func.func @_head_kernel(%arg0: i32, %arg1: memref<16x128xf32, #tpu.memory_space<vmem>>, %arg2: memref<16x1xf32, #tpu.memory_space<vmem>>, %arg3: memref<128x512xbf16, #tpu.memory_space<vmem>>, %arg4: memref<1x512xf32, #tpu.memory_space<vmem>>, %arg5: memref<512x128xbf16, #tpu.memory_space<vmem>>, %arg6: memref<1x128xf32, #tpu.memory_space<vmem>>, %arg7: memref<16x128xbf16, #tpu.memory_space<vmem>>) attributes {dimension_semantics = [#tpu.dimension_semantics<parallel>], iteration_bounds = array<i64: 1>, scalar_prefetch = 0 : i64, scratch_operands = 0 : i64, tpu.core_type = #tpu.core_type<tc>, window_params = [{transform_indices = @transform_0, window_bounds = array<i64: 16, 128>}, {transform_indices = @transform_1, window_bounds = array<i64: 16, 1>}, {pipeline_mode = #tpu.pipeline_mode<synchronous>, transform_indices = @transform_2, window_bounds = array<i64: 128, 512>}, {pipeline_mode = #tpu.pipeline_mode<synchronous>, transform_indices = @transform_3, window_bounds = array<i64: 1, 512>}, {pipeline_mode = #tpu.pipeline_mode<synchronous>, transform_indices = @transform_4, window_bounds = array<i64: 512, 128>}, {pipeline_mode = #tpu.pipeline_mode<synchronous>, transform_indices = @transform_5, window_bounds = array<i64: 1, 128>}, {transform_indices = @transform_6, window_bounds = array<i64: 16, 128>}]} {
    %c0 = arith.constant 0 : index
    %c0_0 = arith.constant 0 : index
    %0 = vector.load %arg1[%c0, %c0_0] : memref<16x128xf32, #tpu.memory_space<vmem>>, vector<16x128xf32>
    %c0_1 = arith.constant 0 : index
    %c0_2 = arith.constant 0 : index
    %1 = vector.load %arg2[%c0_1, %c0_2] : memref<16x1xf32, #tpu.memory_space<vmem>>, vector<16x1xf32>
    %2 = vector.broadcast %1 : vector<16x1xf32> to vector<16x128xf32>
    %3 = arith.mulf %0, %2 : vector<16x128xf32>
    %4 = arith.truncf %3 : vector<16x128xf32> to vector<16x128xbf16>
    %c0_3 = arith.constant 0 : index
    %c0_4 = arith.constant 0 : index
    %5 = vector.load %arg3[%c0_3, %c0_4] : memref<128x512xbf16, #tpu.memory_space<vmem>>, vector<128x512xbf16>
    %cst = arith.constant dense<0.000000e+00> : vector<16x512xf32>
    %6 = tpu.matmul %4, %5, %cst {dimension_numbers = #tpu.dot_dimension_numbers<[1], [0], [0], [1], [0, 0, 1, 1], [], []>} : vector<16x128xbf16>, vector<128x512xbf16>, vector<16x512xf32> -> vector<16x512xf32>
    %c0_5 = arith.constant 0 : index
    %c0_6 = arith.constant 0 : index
    %7 = vector.load %arg4[%c0_5, %c0_6] : memref<1x512xf32, #tpu.memory_space<vmem>>, vector<1x512xf32>
    %8 = vector.broadcast %7 : vector<1x512xf32> to vector<16x512xf32>
    %9 = arith.addf %6, %8 : vector<16x512xf32>
    %cst_7 = arith.constant 0.000000e+00 : f32
    %10 = vector.broadcast %cst_7 : f32 to vector<16x512xf32>
    %11 = arith.maximumf %9, %10 : vector<16x512xf32>
    %12 = arith.truncf %11 : vector<16x512xf32> to vector<16x512xbf16>
    %c0_8 = arith.constant 0 : index
    %c0_9 = arith.constant 0 : index
    %13 = vector.load %arg5[%c0_8, %c0_9] : memref<512x128xbf16, #tpu.memory_space<vmem>>, vector<512x128xbf16>
    %cst_10 = arith.constant dense<0.000000e+00> : vector<16x128xf32>
    %14 = tpu.matmul %12, %13, %cst_10 {dimension_numbers = #tpu.dot_dimension_numbers<[1], [0], [0], [1], [0, 0, 1, 1], [], []>} : vector<16x512xbf16>, vector<512x128xbf16>, vector<16x128xf32> -> vector<16x128xf32>
    %c0_11 = arith.constant 0 : index
    %c0_12 = arith.constant 0 : index
    %15 = vector.load %arg6[%c0_11, %c0_12] : memref<1x128xf32, #tpu.memory_space<vmem>>, vector<1x128xf32>
    %16 = vector.broadcast %15 : vector<1x128xf32> to vector<16x128xf32>
    %17 = arith.addf %14, %16 : vector<16x128xf32>
    %18 = arith.truncf %17 : vector<16x128xf32> to vector<16x128xbf16>
    %c0_13 = arith.constant 0 : index
    %c0_14 = arith.constant 0 : index
    %19 = vector.load %arg7[%c0_13, %c0_14] : memref<16x128xbf16, #tpu.memory_space<vmem>>, vector<16x128xbf16>
    tpu.vector_store %arg7[%c0_13, %c0_14], %18 {strides = array<i32>} : memref<16x128xbf16, #tpu.memory_space<vmem>>, vector<16x128xbf16>,
    return
  }
  func.func @transform_0(%arg0: i32) -> (i32, i32) {
    %c0_i32 = arith.constant 0 : i32
    %c0_i32_0 = arith.constant 0 : i32
    return %arg0, %c0_i32 : i32, i32
  }
  func.func @transform_1(%arg0: i32) -> (i32, i32) {
    %c0_i32 = arith.constant 0 : i32
    %c0_i32_0 = arith.constant 0 : i32
    return %arg0, %c0_i32 : i32, i32
  }
  func.func @transform_2(%arg0: i32) -> (i32, i32) {
    %c0_i32 = arith.constant 0 : i32
    %c0_i32_0 = arith.constant 0 : i32
    %c0_i32_1 = arith.constant 0 : i32
    return %c0_i32, %c0_i32_0 : i32, i32
  }
  func.func @transform_3(%arg0: i32) -> (i32, i32) {
    %c0_i32 = arith.constant 0 : i32
    %c0_i32_0 = arith.constant 0 : i32
    %c0_i32_1 = arith.constant 0 : i32
    return %c0_i32, %c0_i32_0 : i32, i32
  }
  func.func @transform_4(%arg0: i32) -> (i32, i32) {
    %c0_i32 = arith.constant 0 : i32
    %c0_i32_0 = arith.constant 0 : i32
    %c0_i32_1 = arith.constant 0 : i32
    return %c0_i32, %c0_i32_0 : i32, i32
  }
  func.func @transform_5(%arg0: i32) -> (i32, i32) {
    %c0_i32 = arith.constant 0 : i32
    %c0_i32_0 = arith.constant 0 : i32
    %c0_i32_1 = arith.constant 0 : i32
    return %c0_i32, %c0_i32_0 : i32, i32
  }
  func.func @transform_6(%arg0: i32) -> (i32, i32) {
    %c0_i32 = arith.constant 0 : i32
    %c0_i32_0 = arith.constant 0 : i32
    return %arg0, %c0_i32 : i32, i32
  }
}

</mosaic_0001>

<bundles_post_ra>
// kernel: tpu_custom_call.1
= control target key start
LH: loop header
LB: loop body
LE: loop exit
PB: predicated region body
PF: predicated region fallthrough
CT: control target
= control target key end

     0   :  { %6 = vsyncpa [#allocation3], 0  ;;  %s482_s0 = inlined_call_operand.hbm [shape: f32[8,128], index: 0, kind: input, shape index: {}]   ;;  %s483_s1 = inlined_call_operand.hbm [shape: f32[16,128], index: 1, kind: output, shape index: {}]  }
   0x1   :  { %7 = vsyncpa [#allocation4], 0 }
   0x2   :  { %9 = vsyncpa [#allocation4 + $0x1], 0  ;;  %s352_s6 = smov 0   ;;  %s354_s7 = smov 0  }
   0x3   :  { %s356_s8 = smov 0   ;;  %s358_s9 = smov 0  }
   0x4 LB: > { %s373_s10 = sadd.s32 4294967295, %s338_s9   ;;  %s184_s11 = sadd.s32 4294967294, %s338_s9   ;;  %s338_s9 = sphi %s358_s9, %s499_s9   ;;  %s334_s8 = sphi %s356_s8, %s498_s8   ;;  %s330_s7 = sphi %s354_s7, %s497_s7   ;;  %s326_s6 = sphi %s352_s6, %s496_s6  }
   0x5   : > { %s377_s12 = sadd.s32 1, %s338_s9   ;;  %s43_s13 = sadd.s32 1, %s334_s8 }
   0x6   : > { %s40_s14 = ssub.s32 %s338_s9, %s377_s12  ;;  %p53_p0 = scmp.ne.s32.totalorder %s334_s8, %s330_s7 }
   0x7   : > { %p41_p1 = scmp.eq.s32.totalorder %s40_s14, 0  ;;  %p54_p2 = scmp.eq.s32.totalorder %s373_s10, 1 }
   0x8   : > { %p59_p3 = scmp.ne.s32.totalorder %s330_s7, %s326_s6  ;;  %p60_p4 = scmp.eq.s32.totalorder %s184_s11, 1 }
   0x9   : > { %s388_s15 = scalar_select %p41_p1, %s334_s8, %s43_s13  }
   0xa   : > { %p390_p5 = por %p54_p2, %p53_p0  ;;  %p394_p6 = por %p60_p4, %p59_p3 }
   0xb   : > { %p185_p7 = scmp.ge.s32.totalorder %s338_s9, 1  ;;  %p67_p8 = scmp.lt.s32.totalorder %s338_s9, 3 }
   0xc   : > { %s487_s16 = scalar_select %p390_p5, 1, 0 }
   0xd   : > { %s488_s17 = scalar_select %p394_p6, 1, 0 }
   0xe   : > { %p484_p9 = scmp.eq.s32.totalorder %s373_s10, 0  ;;  %p401_p10 = pnand %p185_p7, %p67_p8 }
   0xf   : > { %s340_s19 = smov [#allocation2]   ;;  %s244_s24 = scalar_lea.hbm %s482_s0, 128 }
  0x10   : > { %s489_s18 = scalar_select %p401_p10, 1, 0 }
  0x11   : > { %s80_s20 = sshll.u32 %s340_s19, 4  ;;  %p200_p11 = pneg %p401_p10  ;;  %s81_s20 = int_to_ptr.vmem [resolvable:$true] %s80_s20 }
  0x12   : > { %p245_p13 = scmp.ne.s32.totalorder %s482_s0, %s244_s24  ;;  %p251_p3 = scmp.lt.u32.totalorder %s244_s24, %s482_s0 }
  0x13   : > { %p409_p12 = pnand %p484_p9, %p200_p11 }
  0x15   : > { %p246_p0 = pneg %p409_p12 }
  0x17   : > { %p247_p1 = pnand %p246_p0, %p245_p13 }
  0x19   : > { %p248_p2 = pneg %p247_p1 }
  0x1b   : > { %p253_p4 = pnand %p251_p3, %p248_p2 }
  0x1d   : > { %256 = shalt.err (!%p253_p4)
}
  0x1e   : > { %s257_s29 = scalar_lea.vmem %s81_s20, 128  ;;  %p265_p9 = scmp.lt.s32.totalorder %s81_s20, %s81_s20 }
  0x1f   : > { %p258_p7 = scmp.ne.s32.totalorder %s81_s20, %s257_s29  ;;  %p266_p6 = scmp.lt.s32.totalorder %s257_s29, %s257_s29 }
  0x21   : > { %p260_p8 = pnand %p258_p7, %p246_p0  ;;  %p267_p5 = por %p266_p6, %p265_p9 }
  0x23   : > { %p261_p11 = pneg %p260_p8 }
  0x25   : > { %p268_p10 = pnand %p267_p5, %p261_p11 }
  0x27   : > { %271 = shalt.err (!%p268_p10)
}
  0x28   : > { %203 = dma.hbm_to_vmem [thread:$0]  (!%p409_p12), %s482_s0, 128, %s81_s20, [#allocation3]  }
  0x29   : > { %p491_p13 = scmp.ne.s32.totalorder %s489_s18, 0 }
  0x2a   : > { %p492_p1 = scmp.eq.s32.totalorder (!%p491_p13), %s373_s10, 0 }
  0x2b   : > { %93 = sbr.rel (%p491_p13) target bundleno = 77 (0x4d), region = 24 }
  0x32   : > { %317 = dma.done.wait (%p492_p1), [#allocation3], 128   ;;  %p493_p0 = pmov %p492_p1 }
  0x33   : > { %s105_s3 = sand.u32 1, %s330_s7   ;;  %s191_s13 = sshll.u32 %s373_s10, 7  ;;  %v108_v0 = vld [vmem:[#allocation2] sm:$0xff] }
  0x34   : > { %319 = vsyncadd (%p493_p0), [#allocation3], 4294967168  ;;  %s189_s4 = sshll.u32 %s105_s3, 3  ;;  %v109_v1 = vadd.f32 1.0, %v108_v0  ;;  %s442_s19 = scalar_lea.hbm %s483_s1, %s191_s13 }
  0x35   : > { %s107_s5 = scalar_lea.vmem [#allocation5], %s189_s4  ;;  %s112_s20 = scalar_lea.sflag [#allocation4], %s105_s3 }
  0x36   : > { %s125_s11 = sshll.u32 %s107_s5, 4  ;;  %110 = vst [vmem:[%s107_s5] sm:$0xff] %v109_v1  ;;  %p494_p6 = scmp.ne.s32.totalorder %s487_s16, 0  ;;  %s437_s11 = int_to_ptr.vmem [resolvable:$true] %s125_s11 }
  0x37   : > { %s272_s21 = scalar_lea.vmem %s437_s11, 128  ;;  %s341_s10 = smov [#allocation5]  }
  0x38   : > { %p273_p5 = scmp.ne.s32.totalorder %s437_s11, %s272_s21  ;;  %s276_s22 = sshll.u32 %s341_s10, 4  ;;  %s277_s22 = int_to_ptr.vmem [resolvable:$false] %s276_s22 }
  0x39   : > { %s278_s23 = scalar_lea.vmem %s277_s22, 256  ;;  %p279_p12 = scmp.lt.s32.totalorder %s437_s11, %s277_s22 }
  0x3a   : > { %p274_p9 = pnand %p273_p5, %p494_p6  ;;  %p280_p2 = scmp.lt.s32.totalorder %s278_s23, %s272_s21 }
  0x3c   : > { %p275_p10 = pneg %p274_p9  ;;  %p281_p3 = por %p280_p2, %p279_p12 }
  0x3e   : > { %p282_p4 = pnand %p281_p3, %p275_p10 }
  0x40   : > { %285 = shalt.err (!%p282_p4)
}
  0x41   : > { %s286_s24 = scalar_lea.hbm %s442_s19, 128  ;;  %s290_s27 = scalar_lea.hbm %s483_s1, 256 }
  0x42   : > { %p287_p7 = scmp.ne.s32.totalorder %s442_s19, %s286_s24  ;;  %p291_p13 = scmp.lt.u32.totalorder %s442_s19, %s483_s1 }
  0x43   : > { %p292_p1 = scmp.lt.u32.totalorder %s290_s27, %s286_s24  ;;  %p294_p5 = scmp.lt.u32.totalorder %s286_s24, %s442_s19 }
  0x44   : > { %p288_p8 = pnand %p287_p7, %p494_p6 }
  0x45   : > { %p293_p0 = por %p292_p1, %p291_p13 }
  0x46   : > { %p289_p11 = pneg %p288_p8 }
  0x47   : > { %p295_p9 = por %p294_p5, %p293_p0 }
  0x49   : > { %p296_p10 = pnand %p295_p9, %p289_p11 }
  0x4b   : > { %299 = shalt.err (!%p296_p10)
}
  0x4c   : > { %198 = dma.vmem_to_hbm [thread:$0]  (%p494_p6), %s437_s11, 128, %s442_s19, %s112_s20  }
  0x4d PF: > { %p210_p12 = scmp.ge.s32.totalorder %s338_s9, 2  ;;  %s137_s30 = sand.u32 1, %s326_s6  }
  0x4e   : > { %p495_p2 = scmp.ne.s32.totalorder %s488_s17, 0  ;;  %s138_s2 = scalar_lea.sflag [#allocation4], %s137_s30 }
  0x50   : > { %p205_p3 = pnand %p210_p12, %p495_p2 }
  0x52   : > { %321 = dma.done.wait (!%p205_p3), %s138_s2, 128  }
  0x53   : > { %323 = vsyncadd (!%p205_p3), %s138_s2, 4294967168  ;;  %p12_p4 = scmp.ge.s32.totalorder %s377_s12, 4   ;;  %s496_s6 = smov %s330_s7 }
  0x54   : > { %s497_s7 = smov %s334_s8  ;;  %s498_s8 = smov %s388_s15 }
  0x55   : > { %s499_s9 = smov %s377_s12  ;;  %14 = sbr.rel (!%p12_p4) target bundleno = 4 (0x4), region = 61 }
  0x5c   :  { %143 = vsyncpa [#allocation3], 1 }
  0x5d   :  { %145 = vsyncpa [#allocation3 + $0x1], 1 }
  0x5e   :  { %146 = vsyncpa [#allocation4], 1 }
  0x5f   :  { %148 = vsyncpa [#allocation4 + $0x1], 1 }

// kernel: simple_classifier_forward.1
= control target key start
LH: loop header
LB: loop body
LE: loop exit
PB: predicated region body
PF: predicated region fallthrough
CT: control target
= control target key end

     0   :  { %v912_v0 = vmov 0   ;;  %s1161_s1 = inlined_call_operand.vmem [shape: f32[16,1], index: 1, kind: input, shape index: {}]   ;;  %s1162_s2 = inlined_call_operand.vmem [shape: bf16[128,512], index: 2, kind: input, shape index: {}]   ;;  %s1163_s4 = inlined_call_operand.vmem [shape: bf16[512,128], index: 4, kind: input, shape index: {}]   ;;  %s1164_s0 = inlined_call_operand.vmem [shape: f32[16,128], index: 0, kind: input, shape index: {}]   ;;  %s1165_s3 = inlined_call_operand.vmem [shape: f32[1,512], index: 3, kind: input, shape index: {}]   ;;  %s1166_s5 = inlined_call_operand.vmem [shape: f32[1,128], index: 5, kind: input, shape index: {}]   ;;  %s1167_s6 = inlined_call_operand.vmem [shape: bf16[16,128], index: 6, kind: output, shape index: {}]  }
   0x1   :  { %831 = vset.pattern.permute.xlu0 %v912_v0  ;;  %v26_v1 = vld [vmem:[%s1161_s1] sm:$0xff]  ;;  %v27_v2 = vld [vmem:[%s1161_s1 + $0x8] sm:$0xff]  ;;  %287 = vmatprep.mubr.bf16.mxu0 %v912_v0  ;;  %v888_v50 = vld [vmem:[%s1163_s4 + $0x50] sm:$0xff]  }
   0x2   :  { %30 = vperm.xlu0 %831, %v26_v1   ;;  %v832_v3 = vld [vmem:[%s1162_s2 + $0x4] ss:$16 sps:$4 sm:$0xff]   ;;  %330 = vmatprep.mubr.bf16.mxu1 %v912_v0  ;;  %v834_v4 = vld [vmem:[%s1162_s2 + $0xc] ss:$16 sps:$4 sm:$0xff]   ;;  %v836_v5 = vld [vmem:[%s1162_s2] ss:$16 sps:$4 sm:$0xff]  }
   0x3   :  { %255 = vmatprep.subr.bf16.mxu0 %v832_v3  ;;  %v837_v6 = vld [vmem:[%s1162_s2 + $0x8] ss:$16 sps:$4 sm:$0xff]   ;;  %298 = vmatprep.subr.bf16.mxu1 %v834_v4  ;;  %v838_v7 = vld [vmem:[%s1162_s2 + $0x24] ss:$16 sps:$4 sm:$0xff]   ;;  %v840_v8 = vld [vmem:[%s1162_s2 + $0x2c] ss:$16 sps:$4 sm:$0xff]  }
   0x4   :  { %256 = vmatpush1.bf16.msra.mxu0 %v836_v5  ;;  %299 = vmatpush1.bf16.msra.mxu1 %v837_v6  ;;  %v842_v9 = vld [vmem:[%s1162_s2 + $0x20] ss:$16 sps:$4 sm:$0xff]   ;;  %v843_v10 = vld [vmem:[%s1162_s2 + $0x28] ss:$16 sps:$4 sm:$0xff]   ;;  %v844_v11 = vld [vmem:[%s1162_s2 + $0x44] ss:$16 sps:$4 sm:$0xff]  }
   0x5   :  { %257 = vmatprep.subr.bf16.mxu0 %v838_v7  ;;  %300 = vmatprep.subr.bf16.mxu1 %v840_v8  ;;  %v846_v12 = vld [vmem:[%s1162_s2 + $0x4c] ss:$16 sps:$4 sm:$0xff]   ;;  %v848_v13 = vld [vmem:[%s1162_s2 + $0x40] ss:$16 sps:$4 sm:$0xff]   ;;  %v849_v14 = vld [vmem:[%s1162_s2 + $0x48] ss:$16 sps:$4 sm:$0xff]  }
   0x6   :  { %35 = vperm.xlu0 %831, %v27_v2   ;;  %v850_v15 = vld [vmem:[%s1162_s2 + $0x64] ss:$16 sps:$4 sm:$0xff]   ;;  %v852_v16 = vld [vmem:[%s1162_s2 + $0x6c] ss:$16 sps:$4 sm:$0xff]   ;;  %v854_v17 = vld [vmem:[%s1162_s2 + $0x60] ss:$16 sps:$4 sm:$0xff]  }
   0x7   :  { %v855_v18 = vld [vmem:[%s1162_s2 + $0x68] ss:$16 sps:$4 sm:$0xff]   ;;  %v856_v19 = vld [vmem:[%s1162_s2 + $0x84] ss:$16 sps:$4 sm:$0xff]   ;;  %v858_v20 = vld [vmem:[%s1162_s2 + $0x8c] ss:$16 sps:$4 sm:$0xff]  }
   0x8   :  { %258 = vmatpush1.bf16.msra.mxu0 %v842_v9  ;;  %301 = vmatpush1.bf16.msra.mxu1 %v843_v10  ;;  %v860_v21 = vld [vmem:[%s1162_s2 + $0x80] ss:$16 sps:$4 sm:$0xff]   ;;  %v861_v22 = vld [vmem:[%s1162_s2 + $0x88] ss:$16 sps:$4 sm:$0xff]   ;;  %v862_v23 = vld [vmem:[%s1162_s2 + $0xa4] ss:$16 sps:$4 sm:$0xff]   ;;  %v75_v10 = vlaneseq }
   0x9   :  { %259 = vmatprep.subr.bf16.mxu0 %v844_v11  ;;  %302 = vmatprep.subr.bf16.mxu1 %v846_v12  ;;  %v864_v24 = vld [vmem:[%s1162_s2 + $0xac] ss:$16 sps:$4 sm:$0xff]   ;;  %v866_v25 = vld [vmem:[%s1162_s2 + $0xa0] ss:$16 sps:$4 sm:$0xff]   ;;  %v867_v26 = vld [vmem:[%s1162_s2 + $0xa8] ss:$16 sps:$4 sm:$0xff]  }
   0xa   :  { %v868_v27 = vld [vmem:[%s1162_s2 + $0xc4] ss:$16 sps:$4 sm:$0xff]   ;;  %v870_v28 = vld [vmem:[%s1162_s2 + $0xcc] ss:$16 sps:$4 sm:$0xff]   ;;  %v872_v29 = vld [vmem:[%s1162_s2 + $0xc0] ss:$16 sps:$4 sm:$0xff]  }
   0xb   :  { %v873_v30 = vld [vmem:[%s1162_s2 + $0xc8] ss:$16 sps:$4 sm:$0xff]   ;;  %v874_v31 = vld [vmem:[%s1162_s2 + $0xe4] ss:$16 sps:$4 sm:$0xff]   ;;  %v876_v32 = vld [vmem:[%s1162_s2 + $0xec] ss:$16 sps:$4 sm:$0xff]  }
   0xc   :  { %260 = vmatpush1.bf16.msra.mxu0 %v848_v13  ;;  %303 = vmatpush1.bf16.msra.mxu1 %v849_v14  ;;  %v878_v33 = vld [vmem:[%s1162_s2 + $0xe0] ss:$16 sps:$4 sm:$0xff]   ;;  %v879_v34 = vld [vmem:[%s1162_s2 + $0xe8] ss:$16 sps:$4 sm:$0xff]   ;;  %v76_v11 = vshrl.u32 %v75_v10, 7 }
   0xd   :  { %261 = vmatprep.subr.bf16.mxu0 %v850_v15  ;;  %304 = vmatprep.subr.bf16.mxu1 %v852_v16  ;;  %v880_v35 = vld [vmem:[%s1163_s4 + $0x40] sm:$0xff]   ;;  %v25_v39 = vld [vmem:[%s1164_s0 + $0x8] sm:$0xff]  ;;  %v889_v51 = vld [vmem:[%s1163_s4 + $0xd0] sm:$0xff]  }
   0xe   :  { %v881_v36 = vld [vmem:[%s1163_s4 + $0xc0] sm:$0xff]   ;;  %v884_v46 = vld [vmem:[%s1163_s4 + $0x48] sm:$0xff]   ;;  %v890_v52 = vld [vmem:[%s1163_s4 + $0x10] sm:$0xff]   ;;  %v77_v12 = vsub.s32 0, %v76_v11  ;;  %v85_v13 = vsub.s32 2, %v76_v11  ;;  %v81_v15 = vsub.s32 1, %v76_v11 }
   0xf   :  { %v24_v38 = vld [vmem:[%s1164_s0] sm:$0xff]  ;;  %v885_v47 = vld [vmem:[%s1163_s4 + $0xc8] sm:$0xff]   ;;  %v891_v53 = vld [vmem:[%s1163_s4 + $0x90] sm:$0xff]   ;;  %v89_v16 = vsub.s32 3, %v76_v11 }
  0x10   :  { %262 = vmatpush1.bf16.msra.mxu0 %v854_v17  ;;  %305 = vmatpush1.bf16.msra.mxu1 %v855_v18  ;;  %v882_v43 = vld [vmem:[%s1163_s4] sm:$0xff]   ;;  %v886_v48 = vld [vmem:[%s1163_s4 + $0x8] sm:$0xff]   ;;  %v892_v54 = vld [vmem:[%s1163_s4 + $0x58] sm:$0xff]  }
  0x11   :  { %263 = vmatprep.subr.bf16.mxu0 %v856_v19  ;;  %306 = vmatprep.subr.bf16.mxu1 %v858_v20  ;;  %v883_v44 = vld [vmem:[%s1163_s4 + $0x80] sm:$0xff]   ;;  %v887_v49 = vld [vmem:[%s1163_s4 + $0x88] sm:$0xff]   ;;  %v893_v55 = vld [vmem:[%s1163_s4 + $0xd8] sm:$0xff]  }
  0x12   :  { %v894_v56 = vld [vmem:[%s1163_s4 + $0x18] sm:$0xff]   ;;  %v896_v58 = vld [vmem:[%s1163_s4 + $0x60] sm:$0xff]   ;;  %v900_v62 = vld [vmem:[%s1163_s4 + $0x68] sm:$0xff]  }
  0x13   :  { %v895_v57 = vld [vmem:[%s1163_s4 + $0x98] sm:$0xff]   ;;  %v897_v59 = vld [vmem:[%s1163_s4 + $0xe0] sm:$0xff]   ;;  %v901_v63 = vld [vmem:[%s1163_s4 + $0xe8] sm:$0xff]  }
  0x14   :  { %264 = vmatpush1.bf16.msra.mxu0 %v860_v21  ;;  %307 = vmatpush1.bf16.msra.mxu1 %v861_v22  ;;  %v898_v60 = vld [vmem:[%s1163_s4 + $0x20] sm:$0xff]   ;;  %v902_v0 = vld [vmem:[%s1163_s4 + $0x28] sm:$0xff]   ;;  %v904_v2 = vld [vmem:[%s1163_s4 + $0x70] sm:$0xff]  }
  0x15   :  { %265 = vmatprep.subr.bf16.mxu0 %v862_v23  ;;  %308 = vmatprep.subr.bf16.mxu1 %v864_v24  ;;  %v899_v61 = vld [vmem:[%s1163_s4 + $0xa0] sm:$0xff]   ;;  %v903_v1 = vld [vmem:[%s1163_s4 + $0xa8] sm:$0xff]   ;;  %v905_v3 = vld [vmem:[%s1163_s4 + $0xf0] sm:$0xff]  }
  0x16   :  { %v906_v4 = vld [vmem:[%s1163_s4 + $0x30] sm:$0xff]   ;;  %v908_v6 = vld [vmem:[%s1163_s4 + $0x78] sm:$0xff]   ;;  %v73_v14 = vld [vmem:[%s1165_s3] sm:$0xf] }
  0x17   :  { %v907_v5 = vld [vmem:[%s1163_s4 + $0xb0] sm:$0xff]   ;;  %v909_v7 = vld [vmem:[%s1163_s4 + $0xf8] sm:$0xff]   ;;  %v78_v17 = vrot.slane %v73_v14, %v77_v12  ;;  %v86_v18 = vrot.slane %v73_v14, %v85_v13  ;;  %v82_v19 = vrot.slane %v73_v14, %v81_v15  ;;  %v90_v20 = vrot.slane %v73_v14, %v89_v16 }
  0x18   :  { %266 = vmatpush1.bf16.msra.mxu0 %v866_v25  ;;  %309 = vmatpush1.bf16.msra.mxu1 %v867_v26  ;;  %v910_v8 = vld [vmem:[%s1163_s4 + $0x38] sm:$0xff]  }
  0x19   :  { %267 = vmatprep.subr.bf16.mxu0 %v868_v27  ;;  %310 = vmatprep.subr.bf16.mxu1 %v870_v28  ;;  %v911_v9 = vld [vmem:[%s1163_s4 + $0xb8] sm:$0xff]  }
  0x1c   :  { %268 = vmatpush1.bf16.msra.mxu0 %v872_v29  ;;  %311 = vmatpush1.bf16.msra.mxu1 %v873_v30 }
  0x1d   :  { %269 = vmatprep.subr.bf16.mxu0 %v874_v31  ;;  %312 = vmatprep.subr.bf16.mxu1 %v876_v32 }
  0x20   :  { %270 = vmatpush1.bf16.msra.mxu0 %v878_v33  ;;  %313 = vmatpush1.bf16.msra.mxu1 %v879_v34 }
  0x21   :  { %786 = vmatprep.subr.bf16.mxu0 %v880_v35  ;;  %808 = vmatprep.subr.bf16.mxu1 %v881_v36 }
  0x81   :  { %v31_v37 = vpop.permute.xlu0 %30 }
  0x82   :  { %v38_v41 = vmul.f32 %v31_v37, %v24_v38 }
  0x85   :  { %v36_v40 = vpop.permute.xlu0 %35 }
  0x86   :  { %v39_v42 = vmul.f32 %v36_v40, %v25_v39 }
  0x88   :  { %v40_v45 = vpack.c.bf16 %v39_v42, %v38_v41 }
  0x8a   :  { %288 = vmatmul.mubr.bf16.vlgmr.msra.gmra.mrb[0].mxu0 %v40_v45  ;;  %331 = vmatmul.mubr.bf16.vlgmr.msra.gmra.mrb[0].mxu1 %v40_v45 }
  0x8b   :  { %787 = vmatpush3.bf16.msra.mxu0 %v882_v43  ;;  %809 = vmatpush3.bf16.msra.mxu1 %v883_v44 }
  0x8c   :  { %788 = vmatprep.subr.bf16.mxu0 %v884_v46  ;;  %810 = vmatprep.subr.bf16.mxu1 %v885_v47 }
  0x8f   :  { %789 = vmatpush3.bf16.msra.mxu0 %v886_v48  ;;  %811 = vmatpush3.bf16.msra.mxu1 %v887_v49 }
  0x90   :  { %790 = vmatprep.subr.bf16.mxu0 %v888_v50  ;;  %812 = vmatprep.subr.bf16.mxu1 %v889_v51  ;;  %v744_v51 = vld [vmem:[%s1166_s5] ss:$0 sm:$0xff] }
  0x93   :  { %791 = vmatpush3.bf16.msra.mxu0 %v890_v52  ;;  %813 = vmatpush3.bf16.msra.mxu1 %v891_v53 }
  0x94   :  { %792 = vmatprep.subr.bf16.mxu0 %v892_v54  ;;  %814 = vmatprep.subr.bf16.mxu1 %v893_v55 }
  0x97   :  { %793 = vmatpush3.bf16.msra.mxu0 %v894_v56  ;;  %815 = vmatpush3.bf16.msra.mxu1 %v895_v57 }
  0x98   :  { %794 = vmatprep.subr.bf16.mxu0 %v896_v58  ;;  %816 = vmatprep.subr.bf16.mxu1 %v897_v59 }
  0x9b   :  { %795 = vmatpush3.bf16.msra.mxu0 %v898_v60  ;;  %817 = vmatpush3.bf16.msra.mxu1 %v899_v61 }
  0x9c   :  { %796 = vmatprep.subr.bf16.mxu0 %v900_v62  ;;  %818 = vmatprep.subr.bf16.mxu1 %v901_v63 }
  0x9f   :  { %797 = vmatpush3.bf16.msra.mxu0 %v902_v0  ;;  %819 = vmatpush3.bf16.msra.mxu1 %v903_v1 }
  0xa0   :  { %798 = vmatprep.subr.bf16.mxu0 %v904_v2  ;;  %820 = vmatprep.subr.bf16.mxu1 %v905_v3 }
  0xa3   :  { %799 = vmatpush3.bf16.msra.mxu0 %v906_v4  ;;  %821 = vmatpush3.bf16.msra.mxu1 %v907_v5 }
  0xa4   :  { %800 = vmatprep.subr.bf16.mxu0 %v908_v6  ;;  %822 = vmatprep.subr.bf16.mxu1 %v909_v7 }
  0xa7   :  { %801 = vmatpush3.bf16.msra.mxu0 %v910_v8  ;;  %823 = vmatpush3.bf16.msra.mxu1 %v911_v9 }
 0x15d   :  { %v289_v21 = vpop.f32.mrb[0].mxu0  ;;  %v332_v22 = vpop.f32.mrb[0].mxu1 }
 0x15e   :  { %v290_v23 = vadd.f32 %v289_v21, %v78_v17  ;;  %v333_v24 = vadd.f32 %v332_v22, %v86_v18  ;;  %v291_v25 = vpop.f32.mrb[1].mxu0  ;;  %v334_v26 = vpop.f32.mrb[1].mxu1 }
 0x15f   :  { %v292_v27 = vadd.f32 %v291_v25, %v82_v19  ;;  %v335_v28 = vadd.f32 %v334_v26, %v90_v20  ;;  %v293_v29 = vpop.f32.mrb[2].mxu0  ;;  %v336_v30 = vpop.f32.mrb[2].mxu1 }
 0x160   :  { %v294_v31 = vadd.f32 %v293_v29, %v78_v17  ;;  %v337_v32 = vadd.f32 %v336_v30, %v86_v18  ;;  %v295_v33 = vpop.f32.mrb[3].mxu0  ;;  %v338_v34 = vpop.f32.mrb[3].mxu1  ;;  %v341_v37 = vmax.f32 %v290_v23, 0.0  ;;  %v343_v38 = vmax.f32 %v333_v24, 0.0 }
 0x161   :  { %v296_v35 = vadd.f32 %v295_v33, %v82_v19  ;;  %v339_v36 = vadd.f32 %v338_v34, %v90_v20  ;;  %v342_v41 = vmax.f32 %v292_v27, 0.0  ;;  %v344_v42 = vmax.f32 %v335_v28, 0.0 }
 0x162   :  { %v345_v39 = vmax.f32 %v294_v31, 0.0  ;;  %v347_v40 = vmax.f32 %v337_v32, 0.0 }
 0x163   :  { %v346_v43 = vmax.f32 %v296_v35, 0.0  ;;  %v348_v44 = vmax.f32 %v339_v36, 0.0 }
 0x164   :  { %v349_v45 = vpack.c.bf16 %v345_v39, %v341_v37  ;;  %v351_v46 = vpack.c.bf16 %v347_v40, %v343_v38 }
 0x165   :  { %v350_v47 = vpack.c.bf16 %v346_v43, %v342_v41  ;;  %v352_v48 = vpack.c.bf16 %v348_v44, %v344_v42 }
 0x167   :  { %648 = vmatprep.mubr.bf16.mxu0 %v350_v47  ;;  %689 = vmatprep.mubr.bf16.mxu1 %v352_v48 }
 0x168   :  { %649 = vmatmul.mubr.bf16.vlgmr.msra.gmra.mrb[4].mxu0 %v349_v45  ;;  %690 = vmatmul.mubr.bf16.vlgmr.msra.gmra.mrb[4].mxu1 %v351_v46 }
 0x23b   :  { %v802_v49 = vpop.f32.mrb[4].mxu0  ;;  %v824_v50 = vpop.f32.mrb[4].mxu1 }
 0x23c   :  { %v803_v52 = vpop.f32.mrb[5].mxu0  ;;  %v825_v53 = vpop.f32.mrb[5].mxu1 }
 0x23d   :  { %v804_v54 = vadd.f32 %v803_v52, %v802_v49  ;;  %v826_v55 = vadd.f32 %v825_v53, %v824_v50  ;;  %v805_v56 = vpop.f32.mrb[6].mxu0  ;;  %v827_v57 = vpop.f32.mrb[6].mxu1 }
 0x23e   :  { %v806_v58 = vpop.f32.mrb[7].mxu0  ;;  %v828_v59 = vpop.f32.mrb[7].mxu1 }
 0x23f   :  { %v651_v60 = vadd.f32 %v804_v54, %v744_v51  ;;  %v807_v61 = vadd.f32 %v806_v58, %v805_v56  ;;  %v829_v62 = vadd.f32 %v828_v59, %v827_v57 }
 0x241   :  { %v692_v63 = vadd.f32 %v826_v55, %v651_v60  ;;  %v654_v0 = vadd.f32 %v807_v61, %v744_v51 }
 0x243   :  { %v695_v1 = vadd.f32 %v829_v62, %v654_v0 }
 0x245   :  { %v784_v2 = vpack.c.bf16 %v695_v1, %v692_v63 }
 0x247   :  { %785 = vst [vmem:[%s1167_s6] sm:$0xff] %v784_v2  }

</bundles_post_ra>
